<compile_context>
chip_gen: v5e
topology: v5e:2x2
jax: 0.10.0
libtpu: 0.0.40
codegen_flags: <defaults>
</compile_context>

<pallas_src>
import math

import jax
import jax.numpy as jnp
from jax.experimental import pallas as pl
from jax.experimental.pallas import tpu as pltpu


def _decomposed_embedding_kernel(idx_ref, sw_ref, aw_ref, mask_ref, kb_ref,
                                 atten_ref, out_ref):
    # idx_ref  : (N,) int32 in SMEM (scalar prefetch; consumed by index_maps)
    # sw_ref   : (1, 1, D)  gathered sw row
    # aw_ref   : (1, 1, D)  gathered aw row
    # mask_ref : (1, 1, 1)  gathered mask scalar
    # kb_ref   : (1, D, K)  gathered from_kb row
    # atten_ref: (1, K)     attention weights (grid-invariant)
    # out_ref  : (1, 1, D)
    del idx_ref  # only used by the BlockSpec index_maps

    sig_m = jax.nn.sigmoid(mask_ref[0])                      # (1, 1)
    kb = kb_ref[...]                                         # (1, D, K)
    at = atten_ref[0]                                        # (K,)
    kb_contrib = jnp.sum(kb * at, axis=-1)                   # (1, D)
    row = sw_ref[0] * sig_m + aw_ref[0] + kb_contrib         # (1, D)
    out_ref[0] = row.astype(out_ref.dtype)


def decomposed_embedding_forward(indices, params):
    """indices: integer array of any shape -> output indices.shape + (out_features,)."""
    sw = params["sw"].astype(jnp.float32)          # (V, D)
    aw = params["aw"].astype(jnp.float32)          # (V, D)
    mask = params["mask"].astype(jnp.float32)      # (V,)
    atten = params["atten"].astype(jnp.float32)    # (K,)
    from_kb = params["from_kb"].astype(jnp.float32)  # (V, D, K)

    V, D = sw.shape
    K = atten.shape[0]

    idx_flat = indices.reshape(-1).astype(jnp.int32)   # (N,)
    N = idx_flat.shape[0]

    # Bitcast reshapes only (no data movement): make the last two dims of every
    # gathered block equal the full array dims so the (8,128) tiling rule is
    # trivially satisfied even for single-row blocks.
    sw3 = sw.reshape(V, 1, D)
    aw3 = aw.reshape(V, 1, D)
    mask3 = mask.reshape(V, 1, 1)
    atten2 = atten.reshape(1, K)

    out = pl.pallas_call(
        _decomposed_embedding_kernel,
        out_shape=jax.ShapeDtypeStruct((N, 1, D), jnp.float32),
        grid_spec=pltpu.PrefetchScalarGridSpec(
            num_scalar_prefetch=1,
            grid=(N,),
            in_specs=[
                pl.BlockSpec((1, 1, D), lambda i, idx: (idx[i], 0, 0)),  # sw row
                pl.BlockSpec((1, 1, D), lambda i, idx: (idx[i], 0, 0)),  # aw row
                pl.BlockSpec((1, 1, 1), lambda i, idx: (idx[i], 0, 0)),  # mask
                pl.BlockSpec((1, D, K), lambda i, idx: (idx[i], 0, 0)),  # from_kb row
                pl.BlockSpec((1, K), lambda i, idx: (0, 0)),             # atten
            ],
            out_specs=pl.BlockSpec((1, 1, D), lambda i, idx: (i, 0, 0)),
        ),
        compiler_params=pltpu.CompilerParams(
            dimension_semantics=("parallel",)),  # each lookup is independent
    )(idx_flat, sw3, aw3, mask3, from_kb, atten2)

    return out.reshape(indices.shape + (D,))


def _init_params(key, in_features, out_features, n_kb):
    """Deterministic init mirroring reset_parameters() shapes/bounds (t > 0 case)."""
    bound = 1.0 / math.sqrt(out_features)   # fan_in of sw per torch's convention
    ks = jax.random.split(key, 6)
    u = lambda k, shape, b: jax.random.uniform(k, shape, jnp.float32, -b, b)
    return {
        "sw": u(ks[0], (in_features, out_features), bound),
        "aw": u(ks[1], (in_features, out_features), bound),
        "mask": u(ks[2], (in_features,), bound),
        "bias": u(ks[3], (out_features,), bound),   # unused by forward()
        # set_atten(t > 0, n_kb) + set_knlwledge(from_kb)
        "atten": jax.random.uniform(ks[4], (n_kb,), jnp.float32),
        "from_kb": jax.random.normal(
            ks[5], (in_features, out_features, n_kb), jnp.float32) * 0.01,
    }


if __name__ == "__main__":
    B, T = 2, 8            # batch of index sequences
    V, D, K = 256, 128, 3  # in_features (vocab), out_features (embed dim), n_kb

    key = jax.random.PRNGKey(0)
    k_params, k_idx = jax.random.split(key)
    params = _init_params(k_params, V, D, K)
    indices = jax.random.randint(k_idx, (B, T), 0, V, dtype=jnp.int32)

    out = decomposed_embedding_forward(indices, params)
    out = jax.block_until_ready(out)

    # Pure-JAX reference of the same math (get_weight + F.embedding).
    weight = (params["sw"] * jax.nn.sigmoid(params["mask"])[:, None]
              + params["aw"]
              + jnp.sum(params["atten"] * params["from_kb"], axis=-1))
    ref = weight[indices]

    assert out.shape == (B, T, D)
    assert jnp.allclose(out, ref, atol=1e-5, rtol=1e-5)

    print("KERNEL_OK")
</pallas_src>

<mosaic_0001>
module attributes {stable_mosaic.version = 11 : i64} {
  func.func @_decomposed_embedding_kernel(%arg0: i32, %arg1: memref<16xi32, #tpu.memory_space<smem>>, %arg2: memref<1x1x128xf32, #tpu.memory_space<vmem>>, %arg3: memref<1x1x128xf32, #tpu.memory_space<vmem>>, %arg4: memref<1x1x1xf32, #tpu.memory_space<vmem>>, %arg5: memref<1x128x3xf32, #tpu.memory_space<vmem>>, %arg6: memref<1x3xf32, #tpu.memory_space<vmem>>, %arg7: memref<1x1x128xf32, #tpu.memory_space<vmem>>) attributes {dimension_semantics = [#tpu.dimension_semantics<parallel>], iteration_bounds = array<i64: 16>, scalar_prefetch = 1 : i64, scratch_operands = 0 : i64, tpu.core_type = #tpu.core_type<tc>, window_params = [{transform_indices = @transform_0, window_bounds = array<i64: 1, 1, 128>}, {transform_indices = @transform_1, window_bounds = array<i64: 1, 1, 128>}, {transform_indices = @transform_2, window_bounds = array<i64: 1, 1, 1>}, {transform_indices = @transform_3, window_bounds = array<i64: 1, 128, 3>}, {pipeline_mode = #tpu.pipeline_mode<synchronous>, transform_indices = @transform_4, window_bounds = array<i64: 1, 3>}, {transform_indices = @transform_5, window_bounds = array<i64: 1, 1, 128>}]} {
    %c0 = arith.constant 0 : index
    %c0_0 = arith.constant 0 : index
    %c0_1 = arith.constant 0 : index
    %0 = vector.load %arg4[%c0, %c0_0, %c0_1] : memref<1x1x1xf32, #tpu.memory_space<vmem>>, vector<1x1x1xf32>
    %1 = vector.shape_cast %0 : vector<1x1x1xf32> to vector<1x1xf32>
    %2 = arith.negf %1 : vector<1x1xf32>
    %3 = math.exp %2 : vector<1x1xf32>
    %cst = arith.constant 1.000000e+00 : f32
    %4 = vector.broadcast %cst : f32 to vector<1x1xf32>
    %5 = arith.addf %4, %3 : vector<1x1xf32>
    %6 = arith.divf %4, %5 : vector<1x1xf32>
    %c0_2 = arith.constant 0 : index
    %c0_3 = arith.constant 0 : index
    %c0_4 = arith.constant 0 : index
    %7 = vector.load %arg5[%c0_2, %c0_3, %c0_4] : memref<1x128x3xf32, #tpu.memory_space<vmem>>, vector<1x128x3xf32>
    %c0_5 = arith.constant 0 : index
    %c0_6 = arith.constant 0 : index
    %8 = vector.load %arg6[%c0_5, %c0_6] : memref<1x3xf32, #tpu.memory_space<vmem>>, vector<1x3xf32>
    %9 = vector.shape_cast %8 : vector<1x3xf32> to vector<3xf32>
    %10 = vector.shape_cast %9 : vector<3xf32> to vector<1x1x3xf32>
    %11 = vector.broadcast %10 : vector<1x1x3xf32> to vector<1x128x3xf32>
    %12 = arith.mulf %7, %11 : vector<1x128x3xf32>
    %cst_7 = arith.constant dense<0.000000e+00> : vector<1x128xf32>
    %13 = vector.multi_reduction <add>, %12, %cst_7 [2] : vector<1x128x3xf32> to vector<1x128xf32>
    %c0_8 = arith.constant 0 : index
    %c0_9 = arith.constant 0 : index
    %c0_10 = arith.constant 0 : index
    %14 = vector.load %arg2[%c0_8, %c0_9, %c0_10] : memref<1x1x128xf32, #tpu.memory_space<vmem>>, vector<1x1x128xf32>
    %15 = vector.shape_cast %14 : vector<1x1x128xf32> to vector<1x128xf32>
    %16 = vector.broadcast %6 : vector<1x1xf32> to vector<1x128xf32>
    %17 = arith.mulf %15, %16 : vector<1x128xf32>
    %c0_11 = arith.constant 0 : index
    %c0_12 = arith.constant 0 : index
    %c0_13 = arith.constant 0 : index
    %18 = vector.load %arg3[%c0_11, %c0_12, %c0_13] : memref<1x1x128xf32, #tpu.memory_space<vmem>>, vector<1x1x128xf32>
    %19 = vector.shape_cast %18 : vector<1x1x128xf32> to vector<1x128xf32>
    %20 = arith.addf %17, %19 : vector<1x128xf32>
    %21 = arith.addf %20, %13 : vector<1x128xf32>
    %c0_14 = arith.constant 0 : index
    %c0_15 = arith.constant 0 : index
    %c0_16 = arith.constant 0 : index
    %22 = vector.load %arg7[%c0_14, %c0_15, %c0_16] : memref<1x1x128xf32, #tpu.memory_space<vmem>>, vector<1x1x128xf32>
    %23 = vector.shape_cast %22 : vector<1x1x128xf32> to vector<1x128xf32>
    %24 = vector.shape_cast %21 : vector<1x128xf32> to vector<1x1x128xf32>
    tpu.vector_store %arg7[%c0_14, %c0_15, %c0_16], %24 {strides = array<i32>} : memref<1x1x128xf32, #tpu.memory_space<vmem>>, vector<1x1x128xf32>,
    return
  }
  func.func @transform_0(%arg0: i32, %arg1: memref<16xi32, #tpu.memory_space<smem>>) -> (i32, i32, i32) {
    %0 = arith.index_cast %arg0 : i32 to index
    %1 = memref.load %arg1[%0] : memref<16xi32, #tpu.memory_space<smem>>
    %c0_i32 = arith.constant 0 : i32
    %c0_i32_0 = arith.constant 0 : i32
    %c0_i32_1 = arith.constant 0 : i32
    return %1, %c0_i32, %c0_i32_0 : i32, i32, i32
  }
  func.func @transform_1(%arg0: i32, %arg1: memref<16xi32, #tpu.memory_space<smem>>) -> (i32, i32, i32) {
    %0 = arith.index_cast %arg0 : i32 to index
    %1 = memref.load %arg1[%0] : memref<16xi32, #tpu.memory_space<smem>>
    %c0_i32 = arith.constant 0 : i32
    %c0_i32_0 = arith.constant 0 : i32
    %c0_i32_1 = arith.constant 0 : i32
    return %1, %c0_i32, %c0_i32_0 : i32, i32, i32
  }
  func.func @transform_2(%arg0: i32, %arg1: memref<16xi32, #tpu.memory_space<smem>>) -> (i32, i32, i32) {
    %0 = arith.index_cast %arg0 : i32 to index
    %1 = memref.load %arg1[%0] : memref<16xi32, #tpu.memory_space<smem>>
    %c0_i32 = arith.constant 0 : i32
    %c0_i32_0 = arith.constant 0 : i32
    %c0_i32_1 = arith.constant 0 : i32
    return %1, %c0_i32, %c0_i32_0 : i32, i32, i32
  }
  func.func @transform_3(%arg0: i32, %arg1: memref<16xi32, #tpu.memory_space<smem>>) -> (i32, i32, i32) {
    %0 = arith.index_cast %arg0 : i32 to index
    %1 = memref.load %arg1[%0] : memref<16xi32, #tpu.memory_space<smem>>
    %c0_i32 = arith.constant 0 : i32
    %c0_i32_0 = arith.constant 0 : i32
    %c0_i32_1 = arith.constant 0 : i32
    return %1, %c0_i32, %c0_i32_0 : i32, i32, i32
  }
  func.func @transform_4(%arg0: i32, %arg1: memref<16xi32, #tpu.memory_space<smem>>) -> (i32, i32) {
    %c0_i32 = arith.constant 0 : i32
    %c0_i32_0 = arith.constant 0 : i32
    %c0_i32_1 = arith.constant 0 : i32
    return %c0_i32, %c0_i32_0 : i32, i32
  }
  func.func @transform_5(%arg0: i32, %arg1: memref<16xi32, #tpu.memory_space<smem>>) -> (i32, i32, i32) {
    %c0_i32 = arith.constant 0 : i32
    %c0_i32_0 = arith.constant 0 : i32
    %c0_i32_1 = arith.constant 0 : i32
    return %arg0, %c0_i32, %c0_i32_0 : i32, i32, i32
  }
}

</mosaic_0001>

<bundles_post_ra>
// kernel: tpu_custom_call.1
= control target key start
LH: loop header
LB: loop body
LE: loop exit
PB: predicated region body
PF: predicated region fallthrough
CT: control target
= control target key end

     0   :  { %s1057_s24 = smov [#allocation3]   ;;  %s1282_s0 = inlined_call_operand.vmem [shape: s32[16], index: 0, kind: input, shape index: {}]   ;;  %s1283_s1 = inlined_call_operand.vmem [shape: f32[256,1,128], index: 1, kind: input, shape index: {}]   ;;  %s1284_s2 = inlined_call_operand.vmem [shape: f32[256,1,128], index: 2, kind: input, shape index: {}]   ;;  %s1285_s3 = inlined_call_operand.vmem [shape: f32[256,1,1], index: 3, kind: input, shape index: {}]   ;;  %s1286_s4 = inlined_call_operand.vmem [shape: f32[256,128,3], index: 4, kind: input, shape index: {}]   ;;  %s1287_s5 = inlined_call_operand.vmem [shape: f32[1,3], index: 5, kind: input, shape index: {}]   ;;  %s1288_s6 = inlined_call_operand.hbm [shape: f32[16,1,128], index: 6, kind: output, shape index: {}]  }
   0x1   :  { %s12_s23 = sshll.u32 %s1282_s0, 4  ;;  %s13_s23 = int_to_ptr.vmem [resolvable:$true] %s12_s23 }
   0x2   :  { %15 = dma.vmem_to_smem %s13_s23, 16, %s1057_s24, [#allocation2] }
   0x3   :  { %1035 = dma.done.wait [#allocation2], 16 }
   0x4   :  { %1036 = vsyncadd [#allocation2], 4294967280 }
   0x5   :  { %18 = sfence }
   0x6   :  { %19 = vsyncpa [#allocation5], 0 }
   0x7   :  { %21 = vsyncpa [#allocation5 + $0x1], 0  ;;  %s1097_s25 = smov 0   ;;  %s1099_s26 = smov 0  }
   0x8   :  { %s1101_s27 = smov 0   ;;  %s1103_s28 = smov 0  }
   0x9 LB: > { %s1118_s0 = sadd.s32 4294967295, %s1055_s28   ;;  %s920_s29 = sadd.s32 4294967294, %s1055_s28   ;;  %s1055_s28 = sphi %s1103_s28, %s1294_s28   ;;  %s1051_s27 = sphi %s1101_s27, %s1293_s27   ;;  %s1047_s26 = sphi %s1099_s26, %s1292_s26   ;;  %s1043_s25 = sphi %s1097_s25, %s1291_s25  }
   0xa   : > { %s1122_s30 = sadd.s32 1, %s1055_s28   ;;  %s167_s7 = sadd.s32 1, %s1051_s27 }
   0xb   : > { %s164_s8 = ssub.s32 %s1055_s28, %s1122_s30  ;;  %p177_p0 = scmp.ne.s32.totalorder %s1051_s27, %s1047_s26 }
   0xc   : > { %p165_p1 = scmp.eq.s32.totalorder %s164_s8, 0  ;;  %p178_p2 = scmp.eq.s32.totalorder %s1118_s0, 15 }
   0xd   : > { %p183_p3 = scmp.ne.s32.totalorder %s1047_s26, %s1043_s25  ;;  %p184_p4 = scmp.eq.s32.totalorder %s920_s29, 15 }
   0xe   : > { %s1133_s9 = scalar_select %p165_p1, %s1051_s27, %s167_s7  }
   0xf   : > { %p1135_p5 = por %p178_p2, %p177_p0  ;;  %p1139_p6 = por %p184_p4, %p183_p3 }
  0x10   : > { %p923_p7 = scmp.ge.s32.totalorder %s1055_s28, 1  ;;  %p239_p8 = scmp.lt.s32.totalorder %s1055_s28, 17 }
  0x12   : > { %p240_p9 = pnand %p923_p7, %p239_p8 }
  0x13   : > { %s294_s12 = sld [smem:[#allocation3 + %s1118_s0]] (!%p240_p9)  ;;  %s1011_s7 = scalar_lea.hbm (!%p240_p9), %s1288_s6, 16 }
  0x14   : > { %243 = sbr.rel (%p240_p9) target bundleno = 501 (0x1f5), region = 40  ;;  %s289_s19 = sld [smem:[#allocation3 + %s1118_s0]] (!%p240_p9) }
  0x15   : > { %s279_s23 = sld [smem:[#allocation3 + %s1118_s0]] (!%p240_p9) }
  0x16   : > { %s1218_s24 = sld [smem:[#allocation3 + %s1118_s0]] (!%p240_p9) }
  0x19   : > { %p295_p10 = scmp.lt.s32.totalorder %s294_s12, 255  ;;  %v1149_v0 = vld [vmem:[%s1287_s5] ss:$0 sm:$0xff]  ;;  %vm357_vm0 = vcmask 23552   ;;  %v1058_v49 = vmov 0   ;;  %vm764_vm5 = vcmask 130112  }
  0x1a   : > { %p290_p11 = scmp.lt.s32.totalorder %s289_s19, 255  ;;  %972 = vset.pattern.permute.xlu2 %v1058_v49  ;;  %973 = vset.pattern.permute.xlu0 %v1058_v49  ;;  %vm768_vm6 = vcmask 195712   ;;  %vm772_vm7 = vcmask 261312   ;;  %vm776_vm8 = vcmask 326912   ;;  %vm780_vm9 = vcmask 392512  }
  0x1b   : > { %s1296_s12 = smov (!%p295_p10, %s294_s12), 255  ;;  %971 = vset.pattern.permute.xlu1 %v1058_v49  ;;  %p280_p12 = scmp.lt.s32.totalorder %s279_s23, 255  ;;  %vm784_vm10 = vcmask 458112   ;;  %vm788_vm11 = vcmask 523712   ;;  %vm792_vm12 = vcmask 589312   ;;  %vm796_vm13 = vcmask 654912  }
  0x1c   : > { %s929_s15 = sshll.u32 %s1296_s12, 7  ;;  %s1298_s19 = smov (!%p290_p11, %s289_s19), 255  ;;  %vm800_vm14 = vcmask 720512   ;;  %vm804_vm15 = vcmask 786112  }
  0x1d   : > { %s1154_s18 = scalar_lea.vmem %s1286_s4, %s929_s15  ;;  %s292_s22 = scalar_lea.vmem %s1285_s3, %s1298_s19 }
  0x1e   : > { %v321_v1 = vld [vmem:[%s1154_s18] sm:$0xff]  ;;  %v323_v2 = vld [vmem:[%s1154_s18 + $0x10] sm:$0xff]  ;;  %v322_v6 = vld [vmem:[%s1154_s18 + $0x8] sm:$0xff]  ;;  %p285_p13 = scmp.lt.s32.totalorder %s1218_s24, 255  ;;  %s1300_s23 = smov (!%p280_p12, %s279_s23), 255 }
  0x1f   : > { %v341_v3 = vmul.f32 %v1149_v0, %v321_v1  ;;  %v343_v4 = vmul.f32 %v1149_v0, %v323_v2  ;;  %v325_v5 = vld [vmem:[%s1154_s18 + $0x20] sm:$0xff]  ;;  %v324_v7 = vld [vmem:[%s1154_s18 + $0x18] sm:$0xff]  ;;  %v326_v11 = vld [vmem:[%s1154_s18 + $0x28] sm:$0xff]  ;;  %v342_v13 = vmul.f32 %v1149_v0, %v322_v6  ;;  %s282_s8 = scalar_lea.vmem %s1283_s1, %s1300_s23  ;;  %s277_s12 = sand.u32 1, %s1047_s26  }
  0x20   : > { %v345_v8 = vmul.f32 %v1149_v0, %v325_v5  ;;  %v344_v14 = vmul.f32 %v1149_v0, %v324_v7  ;;  %v346_v15 = vmul.f32 %v1149_v0, %v326_v11  ;;  %v327_v19 = vld [vmem:[%s1154_s18 + $0x30] sm:$0xff]  ;;  %v328_v20 = vld [vmem:[%s1154_s18 + $0x38] sm:$0xff]  ;;  %v329_v21 = vld [vmem:[%s1154_s18 + $0x40] sm:$0xff]  ;;  %s1302_s24 = smov (!%p285_p13, %s1218_s24), 255  ;;  %s278_s19 = scalar_lea.vmem [#allocation4], %s277_s12 }
  0x21   : > { %v358_v9 = vsel %vm357_vm0, %v341_v3, 0.0  ;;  %v364_v10 = vsel %vm357_vm0, %v343_v4, 0.0  ;;  %v361_v16 = vsel %vm357_vm0, %v342_v13, 0.0  ;;  %v347_v22 = vmul.f32 %v1149_v0, %v327_v19  ;;  %v330_v28 = vld [vmem:[%s1154_s18 + $0x48] sm:$0xff]  ;;  %v331_v29 = vld [vmem:[%s1154_s18 + $0x50] sm:$0xff]  ;;  %v332_v30 = vld [vmem:[%s1154_s18 + $0x58] sm:$0xff]  ;;  %s287_s15 = scalar_lea.vmem %s1284_s2, %s1302_s24 }
  0x22   : > { %359 = vadd.xlane.f32.xlu0 %v358_v9  ;;  %365 = vadd.xlane.f32.xlu1 %v364_v10  ;;  %v370_v12 = vsel %vm357_vm0, %v345_v8, 0.0  ;;  %v367_v17 = vsel %vm357_vm0, %v344_v14, 0.0  ;;  %v373_v18 = vsel %vm357_vm0, %v346_v15, 0.0  ;;  %v348_v23 = vmul.f32 %v1149_v0, %v328_v20  ;;  %v333_v37 = vld [vmem:[%s1154_s18 + $0x60] sm:$0xff]  ;;  %v334_v38 = vld [vmem:[%s1154_s18 + $0x68] sm:$0xff]  ;;  %v335_v39 = vld [vmem:[%s1154_s18 + $0x70] sm:$0xff] }
  0x23   : > { %371 = vadd.xlane.f32.xlu2 %v370_v12  ;;  %v349_v24 = vmul.f32 %v1149_v0, %v329_v21  ;;  %v376_v25 = vsel %vm357_vm0, %v347_v22, 0.0  ;;  %v350_v31 = vmul.f32 %v1149_v0, %v330_v28  ;;  %v351_v32 = vmul.f32 %v1149_v0, %v331_v29  ;;  %v336_v46 = vld [vmem:[%s1154_s18 + $0x78] sm:$0xff]  ;;  %v301_v50 = vld [vmem:[%s292_s22] sm:$0x1]  ;;  %s834_s18 = scalar_lea.hbm %s1288_s6, %s1118_s0  ;;  %s836_s20 = sshll.u32 %s278_s19, 4  ;;  %s837_s20 = int_to_ptr.vmem [resolvable:$true] %s836_s20 }
  0x24   : > { %v379_v26 = vsel %vm357_vm0, %v348_v23, 0.0  ;;  %v352_v33 = vmul.f32 %v1149_v0, %v332_v30  ;;  %v353_v40 = vmul.f32 %v1149_v0, %v333_v37  ;;  %v354_v41 = vmul.f32 %v1149_v0, %v334_v38  ;;  %s838_s21 = sshll.u32 %s834_s18, 4  ;;  %s826_s0 = scalar_lea.sflag [#allocation5], %s277_s12  ;;  %s839_s21 = int_to_ptr.hbm [resolvable:$true] %s838_s21 }
  0x25   : > { %v382_v27 = vsel %vm357_vm0, %v349_v24, 0.0  ;;  %v385_v34 = vsel %vm357_vm0, %v350_v31, 0.0  ;;  %v388_v35 = vsel %vm357_vm0, %v351_v32, 0.0  ;;  %v355_v42 = vmul.f32 %v1149_v0, %v335_v39  ;;  %s1005_s22 = sshra.s32 %s839_s21, 4  ;;  %s1006_s22 = int_to_ptr.hbm [resolvable:$true] %s1005_s22 }
  0x26   : > { %v391_v36 = vsel %vm357_vm0, %v352_v33, 0.0  ;;  %v394_v43 = vsel %vm357_vm0, %v353_v40, 0.0  ;;  %v397_v44 = vsel %vm357_vm0, %v354_v41, 0.0  ;;  %v356_v47 = vmul.f32 %v1149_v0, %v336_v46  ;;  %s1007_s23 = scalar_lea.hbm %s1006_s22, 1  ;;  %p1012_p3 = scmp.lt.s32.totalorder %s1006_s22, %s1288_s6 }
  0x27   : > { %v400_v45 = vsel %vm357_vm0, %v355_v42, 0.0  ;;  %v926_v51 = vmul.f32 -1.442695, %v301_v50  ;;  %p1008_p0 = scmp.ne.s32.totalorder %s1006_s22, %s1007_s23  ;;  %p1013_p4 = scmp.lt.s32.totalorder %s1011_s7, %s1007_s23 }
  0x28   : > { %v403_v48 = vsel %vm357_vm0, %v356_v47, 0.0  ;;  %vm808_vm0 = vcmask 851712  }
  0x29   : > { %975 = vpow2.f32 %v926_v51  ;;  %p1009_p1 = pnand %p1008_p0, %p1135_p5  ;;  %p1014_p7 = por %p1013_p4, %p1012_p3 }
  0x2a   : > { %362 = vadd.xlane.f32.xlu0 %v361_v16  ;;  %368 = vadd.xlane.f32.xlu1 %v367_v17 }
  0x2b   : > { %374 = vadd.xlane.f32.xlu2 %v373_v18  ;;  %p1010_p2 = pneg %p1009_p1 }
  0x2d   : > { %p1015_p8 = pnand %p1014_p7, %p1010_p2 }
  0x2f   : > { %v976_v57 = vpop.eup %975 }
  0x30   : > { %v305_v61 = vadd.f32 1.0, %v976_v57 }
  0x32   : > { %377 = vadd.xlane.f32.xlu0 %v376_v25  ;;  %380 = vadd.xlane.f32.xlu1 %v379_v26  ;;  %977 = vrcp.f32 %v305_v61  ;;  %v317_v9 = vand.u32 2147483648, %v305_v61  ;;  %vm311_vm1 = vweird.f32 %v305_v61  ;;  %v315_v11 = vand.u32 2147483647, %v305_v61 }
  0x33   : > { %383 = vadd.xlane.f32.xlu2 %v382_v27 }
  0x34   : > { %v318_v15 = vor.u32 1.1754944e-38, %v317_v9  ;;  %vm316_vm4 = vcmp.eq.f32.partialorder %v315_v11, 8.507059e+37 }
  0x38   : > { %v978_v0 = vpop.eup %977 }
  0x39   : > { %v307_v4 = vmul.f32 %v978_v0, %v305_v61  ;;  %vm312_vm2 = vweird.f32 %v978_v0 }
  0x3a   : > { %386 = vadd.xlane.f32.xlu0 %v385_v34  ;;  %389 = vadd.xlane.f32.xlu1 %v388_v35  ;;  %vm313_vm3 = vmor %vm311_vm1, %vm312_vm2  ;;  %vm812_vm1 = vcmask 917312   ;;  %vm816_vm2 = vcmask 982912  }
  0x3b   : > { %392 = vadd.xlane.f32.xlu2 %v391_v36  ;;  %v308_v8 = vsub.f32 1.0, %v307_v4 }
  0x3d   : > { %v309_v13 = vmul.f32 %v978_v0, %v308_v8 }
  0x3f   : > { %v310_v16 = vadd.f32 %v978_v0, %v309_v13 }
  0x41   : > { %v314_v17 = vsel %vm313_vm3, %v978_v0, %v310_v16  ;;  %vm820_vm3 = vcmask 1048512  }
  0x42   : > { %395 = vadd.xlane.f32.xlu0 %v394_v43  ;;  %398 = vadd.xlane.f32.xlu1 %v397_v44  ;;  %v319_v18 = vsel %vm316_vm4, %v318_v15, %v314_v17 }
  0x43   : > { %401 = vadd.xlane.f32.xlu2 %v400_v45 }
  0x4a   : > { %404 = vadd.xlane.f32.xlu0 %v403_v48 }
  0x5b   : > { %409 = vperm.xlu1 %971, %v319_v18  }
  0x95   : > { %v360_v52 = vpop.xlane.xlu0 %359  ;;  %v366_v19 = vpop.xlane.xlu1 %365 }
  0x96   : > { %v432_v53 = vperm.slane %v360_v52, 0  ;;  %v433_v54 = vperm.slane %v360_v52, 1  ;;  %v434_v55 = vperm.slane %v360_v52, 2  ;;  %v435_v56 = vperm.slane %v360_v52, 3  ;;  %v372_v39 = vpop.xlane.xlu2 %371 }
  0x97   : > { %v436_v58 = vperm.slane %v360_v52, 4  ;;  %v437_v59 = vperm.slane %v360_v52, 5  ;;  %v438_v60 = vperm.slane %v360_v52, 6  ;;  %v439_v62 = vperm.slane %v360_v52, 7 }
  0x98   : > { %560 = vst [vmem:[#allocation1] ss:$9 sm:$0xff] %v432_v53  ;;  %v448_v20 = vperm.slane %v366_v19, 0  ;;  %v449_v21 = vperm.slane %v366_v19, 1  ;;  %v450_v22 = vperm.slane %v366_v19, 2  ;;  %v451_v24 = vperm.slane %v366_v19, 3 }
  0x99   : > { %562 = vst [vmem:[#allocation1 + $0x1] ss:$9 sm:$0xff] %v433_v54  ;;  %v452_v25 = vperm.slane %v366_v19, 4  ;;  %v453_v26 = vperm.slane %v366_v19, 5  ;;  %v454_v27 = vperm.slane %v366_v19, 6  ;;  %v455_v28 = vperm.slane %v366_v19, 7 }
  0x9a   : > { %564 = vst [vmem:[#allocation1 + $0x2] ss:$9 sm:$0xff] %v434_v55  ;;  %v464_v40 = vperm.slane %v372_v39, 0  ;;  %v465_v41 = vperm.slane %v372_v39, 1  ;;  %v466_v42 = vperm.slane %v372_v39, 2  ;;  %v467_v44 = vperm.slane %v372_v39, 3 }
  0x9b   : > { %566 = vst [vmem:[#allocation1 + $0x3] ss:$9 sm:$0xff] %v435_v56  ;;  %v468_v45 = vperm.slane %v372_v39, 4  ;;  %v469_v46 = vperm.slane %v372_v39, 5  ;;  %v470_v47 = vperm.slane %v372_v39, 6  ;;  %v471_v48 = vperm.slane %v372_v39, 7 }
  0x9c   : > { %568 = vst [vmem:[#allocation1 + $0x4] ss:$9 sm:$0xff] %v436_v58 }
  0x9d   : > { %570 = vst [vmem:[#allocation1 + $0x5] ss:$9 sm:$0xff] %v437_v59  ;;  %v363_v63 = vpop.xlane.xlu0 %362  ;;  %v369_v29 = vpop.xlane.xlu1 %368 }
  0x9e   : > { %572 = vst [vmem:[#allocation1 + $0x6] ss:$9 sm:$0xff] %v438_v60  ;;  %v440_v1 = vperm.slane %v363_v63, 0  ;;  %v441_v2 = vperm.slane %v363_v63, 1  ;;  %v442_v3 = vperm.slane %v363_v63, 2  ;;  %v443_v6 = vperm.slane %v363_v63, 3  ;;  %v375_v49 = vpop.xlane.xlu2 %374 }
  0x9f   : > { %574 = vst [vmem:[#allocation1 + $0x7] ss:$9 sm:$0xff] %v439_v62  ;;  %v444_v7 = vperm.slane %v363_v63, 4  ;;  %v445_v10 = vperm.slane %v363_v63, 5  ;;  %v446_v12 = vperm.slane %v363_v63, 6  ;;  %v447_v14 = vperm.slane %v363_v63, 7 }
  0xa0   : > { %v456_v30 = vperm.slane %v369_v29, 0  ;;  %v457_v31 = vperm.slane %v369_v29, 1  ;;  %v458_v32 = vperm.slane %v369_v29, 2  ;;  %v459_v34 = vperm.slane %v369_v29, 3 }
  0xa1   : > { %v460_v35 = vperm.slane %v369_v29, 4  ;;  %v461_v36 = vperm.slane %v369_v29, 5  ;;  %v462_v37 = vperm.slane %v369_v29, 6  ;;  %v463_v38 = vperm.slane %v369_v29, 7 }
  0xa2   : > { %v472_v50 = vperm.slane %v375_v49, 0  ;;  %v473_v51 = vperm.slane %v375_v49, 1  ;;  %v474_v52 = vperm.slane %v375_v49, 2  ;;  %v475_v54 = vperm.slane %v375_v49, 3 }
  0xa3   : > { %v476_v55 = vperm.slane %v375_v49, 4  ;;  %v477_v56 = vperm.slane %v375_v49, 5  ;;  %v478_v57 = vperm.slane %v375_v49, 6  ;;  %v479_v58 = vperm.slane %v375_v49, 7 }
  0xa5   : > { %v378_v59 = vpop.xlane.xlu0 %377 }
  0xa6   : > { %v575_v5 = vld [vmem:[#allocation1] sm:$0xff]  ;;  %v480_v60 = vperm.slane %v378_v59, 0  ;;  %v481_v61 = vperm.slane %v378_v59, 1  ;;  %v482_v62 = vperm.slane %v378_v59, 2  ;;  %v483_v0 = vperm.slane %v378_v59, 3  ;;  %v384_v15 = vpop.xlane.xlu2 %383 }
  0xa7   : > { %576 = vst [vmem:[#allocation1] ss:$9 sm:$0xff] %v440_v1  ;;  %712 = vperm.xlu2 %972, %v575_v5   ;;  %v484_v1 = vperm.slane %v378_v59, 4  ;;  %v487_v4 = vperm.slane %v378_v59, 7  ;;  %v381_v5 = vpop.xlane.xlu1 %380  ;;  %v496_v16 = vperm.slane %v384_v15, 0  ;;  %v497_v17 = vperm.slane %v384_v15, 1 }
  0xa8   : > { %577 = vst [vmem:[#allocation1 + $0x1] ss:$9 sm:$0xff] %v441_v2  ;;  %v485_v2 = vperm.slane %v378_v59, 5  ;;  %v490_v8 = vperm.slane %v381_v5, 2  ;;  %v492_v11 = vperm.slane %v381_v5, 4  ;;  %v494_v13 = vperm.slane %v381_v5, 6 }
  0xa9   : > { %578 = vst [vmem:[#allocation1 + $0x2] ss:$9 sm:$0xff] %v442_v3  ;;  %v486_v3 = vperm.slane %v378_v59, 6  ;;  %v498_v18 = vperm.slane %v384_v15, 2 }
  0xaa   : > { %579 = vst [vmem:[#allocation1 + $0x3] ss:$9 sm:$0xff] %v443_v6  ;;  %v488_v6 = vperm.slane %v381_v5, 0 }
  0xab   : > { %580 = vst [vmem:[#allocation1 + $0x4] ss:$9 sm:$0xff] %v444_v7  ;;  %v489_v7 = vperm.slane %v381_v5, 1 }
  0xac   : > { %581 = vst [vmem:[#allocation1 + $0x5] ss:$9 sm:$0xff] %v445_v10  ;;  %v491_v10 = vperm.slane %v381_v5, 3 }
  0xad   : > { %582 = vst [vmem:[#allocation1 + $0x6] ss:$9 sm:$0xff] %v446_v12  ;;  %v493_v12 = vperm.slane %v381_v5, 5 }
  0xae   : > { %583 = vst [vmem:[#allocation1 + $0x7] ss:$9 sm:$0xff] %v447_v14  ;;  %v495_v14 = vperm.slane %v381_v5, 7 }
  0xb5   : > { %v584_v23 = vld [vmem:[#allocation1] sm:$0xff] }
  0xb6   : > { %585 = vst [vmem:[#allocation1] ss:$9 sm:$0xff] %v448_v20  ;;  %715 = vperm.xlu0 %973, %v584_v23   ;;  %v499_v20 = vperm.slane %v384_v15, 3  ;;  %v502_v23 = vperm.slane %v384_v15, 6 }
  0xb7   : > { %586 = vst [vmem:[#allocation1 + $0x1] ss:$9 sm:$0xff] %v449_v21  ;;  %v500_v21 = vperm.slane %v384_v15, 4 }
  0xb8   : > { %587 = vst [vmem:[#allocation1 + $0x2] ss:$9 sm:$0xff] %v450_v22  ;;  %v501_v22 = vperm.slane %v384_v15, 5 }
  0xb9   : > { %588 = vst [vmem:[#allocation1 + $0x3] ss:$9 sm:$0xff] %v451_v24  ;;  %v503_v24 = vperm.slane %v384_v15, 7 }
  0xba   : > { %589 = vst [vmem:[#allocation1 + $0x4] ss:$9 sm:$0xff] %v452_v25  ;;  %v387_v25 = vpop.xlane.xlu0 %386 }
  0xbb   : > { %590 = vst [vmem:[#allocation1 + $0x5] ss:$9 sm:$0xff] %v453_v26  ;;  %v504_v26 = vperm.slane %v387_v25, 0 }
  0xbc   : > { %591 = vst [vmem:[#allocation1 + $0x6] ss:$9 sm:$0xff] %v454_v27  ;;  %v505_v27 = vperm.slane %v387_v25, 1 }
  0xbd   : > { %592 = vst [vmem:[#allocation1 + $0x7] ss:$9 sm:$0xff] %v455_v28  ;;  %v506_v28 = vperm.slane %v387_v25, 2 }
  0xc4   : > { %v593_v33 = vld [vmem:[#allocation1] sm:$0xff] }
  0xc5   : > { %594 = vst [vmem:[#allocation1] ss:$9 sm:$0xff] %v456_v30  ;;  %718 = vperm.xlu2 %972, %v593_v33   ;;  %v507_v30 = vperm.slane %v387_v25, 3  ;;  %v510_v33 = vperm.slane %v387_v25, 6 }
  0xc6   : > { %595 = vst [vmem:[#allocation1 + $0x1] ss:$9 sm:$0xff] %v457_v31  ;;  %v508_v31 = vperm.slane %v387_v25, 4 }
  0xc7   : > { %596 = vst [vmem:[#allocation1 + $0x2] ss:$9 sm:$0xff] %v458_v32  ;;  %v509_v32 = vperm.slane %v387_v25, 5 }
  0xc8   : > { %597 = vst [vmem:[#allocation1 + $0x3] ss:$9 sm:$0xff] %v459_v34  ;;  %v511_v34 = vperm.slane %v387_v25, 7 }
  0xc9   : > { %598 = vst [vmem:[#allocation1 + $0x4] ss:$9 sm:$0xff] %v460_v35  ;;  %v390_v35 = vpop.xlane.xlu1 %389 }
  0xca   : > { %599 = vst [vmem:[#allocation1 + $0x5] ss:$9 sm:$0xff] %v461_v36  ;;  %v512_v36 = vperm.slane %v390_v35, 0 }
  0xcb   : > { %600 = vst [vmem:[#allocation1 + $0x6] ss:$9 sm:$0xff] %v462_v37  ;;  %v513_v37 = vperm.slane %v390_v35, 1 }
  0xcc   : > { %601 = vst [vmem:[#allocation1 + $0x7] ss:$9 sm:$0xff] %v463_v38  ;;  %v514_v38 = vperm.slane %v390_v35, 2 }
  0xd3   : > { %v602_v43 = vld [vmem:[#allocation1] sm:$0xff] }
  0xd4   : > { %603 = vst [vmem:[#allocation1] ss:$9 sm:$0xff] %v464_v40  ;;  %721 = vperm.xlu1 %971, %v602_v43   ;;  %v515_v40 = vperm.slane %v390_v35, 3  ;;  %v518_v43 = vperm.slane %v390_v35, 6 }
  0xd5   : > { %604 = vst [vmem:[#allocation1 + $0x1] ss:$9 sm:$0xff] %v465_v41  ;;  %v516_v41 = vperm.slane %v390_v35, 4 }
  0xd6   : > { %605 = vst [vmem:[#allocation1 + $0x2] ss:$9 sm:$0xff] %v466_v42  ;;  %v517_v42 = vperm.slane %v390_v35, 5 }
  0xd7   : > { %606 = vst [vmem:[#allocation1 + $0x3] ss:$9 sm:$0xff] %v467_v44  ;;  %v519_v44 = vperm.slane %v390_v35, 7 }
  0xd8   : > { %607 = vst [vmem:[#allocation1 + $0x4] ss:$9 sm:$0xff] %v468_v45  ;;  %v393_v45 = vpop.xlane.xlu2 %392 }
  0xd9   : > { %608 = vst [vmem:[#allocation1 + $0x5] ss:$9 sm:$0xff] %v469_v46  ;;  %v520_v46 = vperm.slane %v393_v45, 0 }
  0xda   : > { %609 = vst [vmem:[#allocation1 + $0x6] ss:$9 sm:$0xff] %v470_v47  ;;  %v521_v47 = vperm.slane %v393_v45, 1 }
  0xdb   : > { %610 = vst [vmem:[#allocation1 + $0x7] ss:$9 sm:$0xff] %v471_v48  ;;  %v522_v48 = vperm.slane %v393_v45, 2 }
  0xe2   : > { %v611_v53 = vld [vmem:[#allocation1] sm:$0xff] }
  0xe3   : > { %612 = vst [vmem:[#allocation1] ss:$9 sm:$0xff] %v472_v50  ;;  %724 = vperm.xlu2 %972, %v611_v53   ;;  %v523_v50 = vperm.slane %v393_v45, 3  ;;  %v526_v53 = vperm.slane %v393_v45, 6 }
  0xe4   : > { %613 = vst [vmem:[#allocation1 + $0x1] ss:$9 sm:$0xff] %v473_v51  ;;  %v524_v51 = vperm.slane %v393_v45, 4 }
  0xe5   : > { %614 = vst [vmem:[#allocation1 + $0x2] ss:$9 sm:$0xff] %v474_v52  ;;  %v525_v52 = vperm.slane %v393_v45, 5 }
  0xe6   : > { %615 = vst [vmem:[#allocation1 + $0x3] ss:$9 sm:$0xff] %v475_v54  ;;  %v527_v54 = vperm.slane %v393_v45, 7 }
  0xe7   : > { %616 = vst [vmem:[#allocation1 + $0x4] ss:$9 sm:$0xff] %v476_v55  ;;  %v396_v55 = vpop.xlane.xlu0 %395 }
  0xe8   : > { %617 = vst [vmem:[#allocation1 + $0x5] ss:$9 sm:$0xff] %v477_v56  ;;  %v528_v56 = vperm.slane %v396_v55, 0 }
  0xe9   : > { %618 = vst [vmem:[#allocation1 + $0x6] ss:$9 sm:$0xff] %v478_v57  ;;  %v529_v57 = vperm.slane %v396_v55, 1 }
  0xea   : > { %619 = vst [vmem:[#allocation1 + $0x7] ss:$9 sm:$0xff] %v479_v58  ;;  %v530_v58 = vperm.slane %v396_v55, 2 }
  0xf1   : > { %v620_v63 = vld [vmem:[#allocation1] sm:$0xff] }
  0xf2   : > { %621 = vst [vmem:[#allocation1] ss:$9 sm:$0xff] %v480_v60  ;;  %727 = vperm.xlu1 %971, %v620_v63   ;;  %v531_v60 = vperm.slane %v396_v55, 3  ;;  %v534_v63 = vperm.slane %v396_v55, 6 }
  0xf3   : > { %622 = vst [vmem:[#allocation1 + $0x1] ss:$9 sm:$0xff] %v481_v61  ;;  %v532_v61 = vperm.slane %v396_v55, 4 }
  0xf4   : > { %623 = vst [vmem:[#allocation1 + $0x2] ss:$9 sm:$0xff] %v482_v62  ;;  %v533_v62 = vperm.slane %v396_v55, 5 }
  0xf5   : > { %624 = vst [vmem:[#allocation1 + $0x3] ss:$9 sm:$0xff] %v483_v0  ;;  %v535_v0 = vperm.slane %v396_v55, 7 }
  0xf6   : > { %625 = vst [vmem:[#allocation1 + $0x4] ss:$9 sm:$0xff] %v484_v1  ;;  %v399_v1 = vpop.xlane.xlu1 %398 }
  0xf7   : > { %626 = vst [vmem:[#allocation1 + $0x5] ss:$9 sm:$0xff] %v485_v2  ;;  %v536_v2 = vperm.slane %v399_v1, 0 }
  0xf8   : > { %627 = vst [vmem:[#allocation1 + $0x6] ss:$9 sm:$0xff] %v486_v3  ;;  %v537_v3 = vperm.slane %v399_v1, 1 }
  0xf9   : > { %628 = vst [vmem:[#allocation1 + $0x7] ss:$9 sm:$0xff] %v487_v4  ;;  %v538_v4 = vperm.slane %v399_v1, 2 }
 0x100   : > { %v629_v9 = vld [vmem:[#allocation1] sm:$0xff] }
 0x101   : > { %630 = vst [vmem:[#allocation1] ss:$9 sm:$0xff] %v488_v6  ;;  %730 = vperm.xlu2 %972, %v629_v9   ;;  %v539_v6 = vperm.slane %v399_v1, 3  ;;  %v542_v9 = vperm.slane %v399_v1, 6 }
 0x102   : > { %631 = vst [vmem:[#allocation1 + $0x1] ss:$9 sm:$0xff] %v489_v7  ;;  %v540_v7 = vperm.slane %v399_v1, 4 }
 0x103   : > { %632 = vst [vmem:[#allocation1 + $0x2] ss:$9 sm:$0xff] %v490_v8  ;;  %v541_v8 = vperm.slane %v399_v1, 5 }
 0x104   : > { %633 = vst [vmem:[#allocation1 + $0x3] ss:$9 sm:$0xff] %v491_v10  ;;  %v543_v10 = vperm.slane %v399_v1, 7 }
 0x105   : > { %634 = vst [vmem:[#allocation1 + $0x4] ss:$9 sm:$0xff] %v492_v11  ;;  %v402_v11 = vpop.xlane.xlu2 %401 }
 0x106   : > { %635 = vst [vmem:[#allocation1 + $0x5] ss:$9 sm:$0xff] %v493_v12  ;;  %v544_v12 = vperm.slane %v402_v11, 0  ;;  %v547_v15 = vperm.slane %v402_v11, 3 }
 0x107   : > { %636 = vst [vmem:[#allocation1 + $0x6] ss:$9 sm:$0xff] %v494_v13  ;;  %v545_v13 = vperm.slane %v402_v11, 1 }
 0x108   : > { %637 = vst [vmem:[#allocation1 + $0x7] ss:$9 sm:$0xff] %v495_v14  ;;  %v546_v14 = vperm.slane %v402_v11, 2 }
 0x10f   : > { %v638_v19 = vld [vmem:[#allocation1] sm:$0xff] }
 0x110   : > { %639 = vst [vmem:[#allocation1] ss:$9 sm:$0xff] %v496_v16  ;;  %733 = vperm.xlu1 %971, %v638_v19   ;;  %v550_v19 = vperm.slane %v402_v11, 6 }
 0x111   : > { %640 = vst [vmem:[#allocation1 + $0x1] ss:$9 sm:$0xff] %v497_v17  ;;  %v548_v17 = vperm.slane %v402_v11, 4 }
 0x112   : > { %641 = vst [vmem:[#allocation1 + $0x2] ss:$9 sm:$0xff] %v498_v18  ;;  %v549_v18 = vperm.slane %v402_v11, 5 }
 0x113   : > { %642 = vst [vmem:[#allocation1 + $0x3] ss:$9 sm:$0xff] %v499_v20  ;;  %v551_v20 = vperm.slane %v402_v11, 7 }
 0x114   : > { %643 = vst [vmem:[#allocation1 + $0x4] ss:$9 sm:$0xff] %v500_v21  ;;  %v405_v21 = vpop.xlane.xlu0 %404 }
 0x115   : > { %644 = vst [vmem:[#allocation1 + $0x5] ss:$9 sm:$0xff] %v501_v22  ;;  %v552_v22 = vperm.slane %v405_v21, 0  ;;  %v555_v25 = vperm.slane %v405_v21, 3 }
 0x116   : > { %645 = vst [vmem:[#allocation1 + $0x6] ss:$9 sm:$0xff] %v502_v23  ;;  %v553_v23 = vperm.slane %v405_v21, 1 }
 0x117   : > { %646 = vst [vmem:[#allocation1 + $0x7] ss:$9 sm:$0xff] %v503_v24  ;;  %v554_v24 = vperm.slane %v405_v21, 2 }
 0x11e   : > { %v647_v29 = vld [vmem:[#allocation1] sm:$0xff] }
 0x11f   : > { %648 = vst [vmem:[#allocation1] ss:$9 sm:$0xff] %v504_v26  ;;  %736 = vperm.xlu0 %973, %v647_v29   ;;  %v558_v29 = vperm.slane %v405_v21, 6 }
 0x120   : > { %649 = vst [vmem:[#allocation1 + $0x1] ss:$9 sm:$0xff] %v505_v27  ;;  %v556_v27 = vperm.slane %v405_v21, 4 }
 0x121   : > { %650 = vst [vmem:[#allocation1 + $0x2] ss:$9 sm:$0xff] %v506_v28  ;;  %v557_v28 = vperm.slane %v405_v21, 5 }
 0x122   : > { %651 = vst [vmem:[#allocation1 + $0x3] ss:$9 sm:$0xff] %v507_v30  ;;  %v559_v30 = vperm.slane %v405_v21, 7 }
 0x123   : > { %652 = vst [vmem:[#allocation1 + $0x4] ss:$9 sm:$0xff] %v508_v31 }
 0x124   : > { %653 = vst [vmem:[#allocation1 + $0x5] ss:$9 sm:$0xff] %v509_v32  ;;  %v713_v32 = vpop.permute.xlu2 %712 }
 0x125   : > { %654 = vst [vmem:[#allocation1 + $0x6] ss:$9 sm:$0xff] %v510_v33  ;;  %v1208_v33 = vpop.permute.xlu1 %409 }
 0x126   : > { %655 = vst [vmem:[#allocation1 + $0x7] ss:$9 sm:$0xff] %v511_v34 }
 0x12c   : > { %v719_v34 = vpop.permute.xlu2 %718 }
 0x12d   : > { %v656_v39 = vld [vmem:[#allocation1] sm:$0xff] }
 0x12e   : > { %657 = vst [vmem:[#allocation1] ss:$9 sm:$0xff] %v512_v36  ;;  %739 = vperm.xlu2 %972, %v656_v39   ;;  %v759_v36 = vlaneseq }
 0x12f   : > { %658 = vst [vmem:[#allocation1 + $0x1] ss:$9 sm:$0xff] %v513_v37 }
 0x130   : > { %659 = vst [vmem:[#allocation1 + $0x2] ss:$9 sm:$0xff] %v514_v38  ;;  %v1210_v38 = vand.u32 127, %v759_v36 }
 0x131   : > { %660 = vst [vmem:[#allocation1 + $0x3] ss:$9 sm:$0xff] %v515_v40 }
 0x132   : > { %661 = vst [vmem:[#allocation1 + $0x4] ss:$9 sm:$0xff] %v516_v41  ;;  %v762_v40 = vadd.s32 4294967288, %v1210_v38  ;;  %v716_v41 = vpop.permute.xlu0 %715  ;;  %v766_v45 = vadd.s32 4294967280, %v1210_v38 }
 0x133   : > { %662 = vst [vmem:[#allocation1 + $0x5] ss:$9 sm:$0xff] %v517_v42 }
 0x134   : > { %663 = vst [vmem:[#allocation1 + $0x6] ss:$9 sm:$0xff] %v518_v43  ;;  %v763_v43 = vperm.slane %v716_v41, %v762_v40 }
 0x135   : > { %664 = vst [vmem:[#allocation1 + $0x7] ss:$9 sm:$0xff] %v519_v44  ;;  %v770_v44 = vadd.s32 4294967272, %v1210_v38 }
 0x13c   : > { %v665_v49 = vld [vmem:[#allocation1] sm:$0xff] }
 0x13d   : > { %666 = vst [vmem:[#allocation1] ss:$9 sm:$0xff] %v520_v46  ;;  %742 = vperm.xlu1 %971, %v665_v49   ;;  %v725_v37 = vpop.permute.xlu2 %724  ;;  %v761_v46 = vperm.slane %v713_v32, %v1210_v38 }
 0x13e   : > { %667 = vst [vmem:[#allocation1 + $0x1] ss:$9 sm:$0xff] %v521_v47 }
 0x13f   : > { %668 = vst [vmem:[#allocation1 + $0x2] ss:$9 sm:$0xff] %v522_v48  ;;  %v765_v48 = vsel %vm764_vm5, %v763_v43, %v761_v46 }
 0x140   : > { %669 = vst [vmem:[#allocation1 + $0x3] ss:$9 sm:$0xff] %v523_v50  ;;  %v778_v50 = vadd.s32 4294967256, %v1210_v38 }
 0x141   : > { %670 = vst [vmem:[#allocation1 + $0x4] ss:$9 sm:$0xff] %v524_v51  ;;  %v767_v51 = vperm.slane %v719_v34, %v766_v45 }
 0x142   : > { %671 = vst [vmem:[#allocation1 + $0x5] ss:$9 sm:$0xff] %v525_v52  ;;  %v774_v52 = vadd.s32 4294967264, %v1210_v38 }
 0x143   : > { %672 = vst [vmem:[#allocation1 + $0x6] ss:$9 sm:$0xff] %v526_v53  ;;  %v769_v53 = vsel %vm768_vm6, %v767_v51, %v765_v48 }
 0x144   : > { %673 = vst [vmem:[#allocation1 + $0x7] ss:$9 sm:$0xff] %v527_v54 }
 0x146   : > { %v722_v35 = vpop.permute.xlu1 %721 }
 0x147   : > { %v771_v49 = vperm.slane %v722_v35, %v770_v44 }
 0x14b   : > { %v674_v59 = vld [vmem:[#allocation1] sm:$0xff] }
 0x14c   : > { %675 = vst [vmem:[#allocation1] ss:$9 sm:$0xff] %v528_v56  ;;  %745 = vperm.xlu0 %973, %v674_v59   ;;  %v773_v56 = vsel %vm772_vm7, %v771_v49, %v769_v53  ;;  %v775_v59 = vperm.slane %v725_v37, %v774_v52 }
 0x14d   : > { %676 = vst [vmem:[#allocation1 + $0x1] ss:$9 sm:$0xff] %v529_v57 }
 0x14e   : > { %677 = vst [vmem:[#allocation1 + $0x2] ss:$9 sm:$0xff] %v530_v58  ;;  %v786_v58 = vadd.s32 4294967240, %v1210_v38 }
 0x14f   : > { %678 = vst [vmem:[#allocation1 + $0x3] ss:$9 sm:$0xff] %v531_v60  ;;  %v782_v60 = vadd.s32 4294967248, %v1210_v38 }
 0x150   : > { %679 = vst [vmem:[#allocation1 + $0x4] ss:$9 sm:$0xff] %v532_v61  ;;  %v790_v61 = vadd.s32 4294967232, %v1210_v38 }
 0x151   : > { %680 = vst [vmem:[#allocation1 + $0x5] ss:$9 sm:$0xff] %v533_v62  ;;  %v777_v62 = vsel %vm776_vm8, %v775_v59, %v773_v56 }
 0x152   : > { %681 = vst [vmem:[#allocation1 + $0x6] ss:$9 sm:$0xff] %v534_v63 }
 0x153   : > { %682 = vst [vmem:[#allocation1 + $0x7] ss:$9 sm:$0xff] %v535_v0 }
 0x15a   : > { %v683_v5 = vld [vmem:[#allocation1] sm:$0xff] }
 0x15b   : > { %684 = vst [vmem:[#allocation1] ss:$9 sm:$0xff] %v536_v2  ;;  %748 = vperm.xlu2 %972, %v683_v5   ;;  %v731_v42 = vpop.permute.xlu2 %730  ;;  %v794_v5 = vadd.s32 4294967224, %v1210_v38 }
 0x15c   : > { %685 = vst [vmem:[#allocation1 + $0x1] ss:$9 sm:$0xff] %v537_v3  ;;  %v783_v2 = vperm.slane %v731_v42, %v782_v60 }
 0x15d   : > { %686 = vst [vmem:[#allocation1 + $0x2] ss:$9 sm:$0xff] %v538_v4  ;;  %v798_v4 = vadd.s32 4294967216, %v1210_v38 }
 0x15e   : > { %687 = vst [vmem:[#allocation1 + $0x3] ss:$9 sm:$0xff] %v539_v6  ;;  %v802_v6 = vadd.s32 4294967208, %v1210_v38 }
 0x15f   : > { %688 = vst [vmem:[#allocation1 + $0x4] ss:$9 sm:$0xff] %v540_v7 }
 0x160   : > { %689 = vst [vmem:[#allocation1 + $0x5] ss:$9 sm:$0xff] %v541_v8 }
 0x161   : > { %690 = vst [vmem:[#allocation1 + $0x6] ss:$9 sm:$0xff] %v542_v9 }
 0x162   : > { %691 = vst [vmem:[#allocation1 + $0x7] ss:$9 sm:$0xff] %v543_v10 }
 0x164   : > { %v728_v39 = vpop.permute.xlu1 %727 }
 0x165   : > { %v779_v57 = vperm.slane %v728_v39, %v778_v50 }
 0x167   : > { %v781_v0 = vsel %vm780_vm9, %v779_v57, %v777_v62 }
 0x168   : > { %v785_v7 = vsel %vm784_vm10, %v783_v2, %v781_v0 }
 0x169   : > { %v692_v16 = vld [vmem:[#allocation1] sm:$0xff] }
 0x16a   : > { %751 = vperm.xlu1 %971, %v692_v16   ;;  %693 = vst [vmem:[#allocation1] ss:$9 sm:$0xff] %v544_v12  ;;  %v412_v16 = vperm.slane %v1208_v33, 0 }
 0x16b   : > { %694 = vst [vmem:[#allocation1 + $0x1] ss:$9 sm:$0xff] %v545_v13 }
 0x16c   : > { %695 = vst [vmem:[#allocation1 + $0x2] ss:$9 sm:$0xff] %v546_v14 }
 0x16d   : > { %696 = vst [vmem:[#allocation1 + $0x3] ss:$9 sm:$0xff] %v547_v15  ;;  %v810_v15 = vadd.s32 4294967192, %v1210_v38 }
 0x16e   : > { %697 = vst [vmem:[#allocation1 + $0x4] ss:$9 sm:$0xff] %v548_v17  ;;  %v806_v17 = vadd.s32 4294967200, %v1210_v38 }
 0x16f   : > { %698 = vst [vmem:[#allocation1 + $0x5] ss:$9 sm:$0xff] %v549_v18 }
 0x170   : > { %699 = vst [vmem:[#allocation1 + $0x6] ss:$9 sm:$0xff] %v550_v19  ;;  %v406_v19 = vld [vmem:[%s282_s8] sm:$0x1] }
 0x171   : > { %700 = vst [vmem:[#allocation1 + $0x7] ss:$9 sm:$0xff] %v551_v20 }
 0x178   : > { %v701_v26 = vld [vmem:[#allocation1] sm:$0xff] }
 0x179   : > { %754 = vperm.xlu0 %973, %v701_v26   ;;  %702 = vst [vmem:[#allocation1] ss:$9 sm:$0xff] %v552_v22  ;;  %v814_v22 = vadd.s32 4294967184, %v1210_v38  ;;  %v413_v26 = vmul.f32 %v412_v16, %v406_v19 }
 0x17a   : > { %703 = vst [vmem:[#allocation1 + $0x1] ss:$9 sm:$0xff] %v553_v23 }
 0x17b   : > { %704 = vst [vmem:[#allocation1 + $0x2] ss:$9 sm:$0xff] %v554_v24  ;;  %v818_v24 = vadd.s32 4294967176, %v1210_v38 }
 0x17c   : > { %705 = vst [vmem:[#allocation1 + $0x3] ss:$9 sm:$0xff] %v555_v25 }
 0x17d   : > { %706 = vst [vmem:[#allocation1 + $0x4] ss:$9 sm:$0xff] %v556_v27 }
 0x17e   : > { %707 = vst [vmem:[#allocation1 + $0x5] ss:$9 sm:$0xff] %v557_v28 }
 0x17f   : > { %708 = vst [vmem:[#allocation1 + $0x6] ss:$9 sm:$0xff] %v558_v29  ;;  %v414_v29 = vld [vmem:[%s287_s15] sm:$0x1] }
 0x180   : > { %709 = vst [vmem:[#allocation1 + $0x7] ss:$9 sm:$0xff] %v559_v30  ;;  %v415_v35 = vadd.f32 %v414_v29, %v413_v26 }
 0x182   : > { %v734_v47 = vpop.permute.xlu1 %733 }
 0x183   : > { %v787_v1 = vperm.slane %v734_v47, %v786_v58 }
 0x185   : > { %v789_v10 = vsel %vm788_vm11, %v787_v1, %v785_v7 }
 0x187   : > { %v710_v31 = vld [vmem:[#allocation1] sm:$0xff] }
 0x188   : > { %757 = vperm.xlu2 %972, %v710_v31   ;;  %v740_v54 = vpop.permute.xlu2 %739 }
 0x189   : > { %v795_v13 = vperm.slane %v740_v54, %v794_v5 }
 0x191   : > { %v737_v55 = vpop.permute.xlu0 %736 }
 0x192   : > { %v791_v3 = vperm.slane %v737_v55, %v790_v61 }
 0x194   : > { %v793_v11 = vsel %vm792_vm12, %v791_v3, %v789_v10 }
 0x195   : > { %v797_v20 = vsel %vm796_vm13, %v795_v13, %v793_v11 }
 0x1af   : > { %v743_v63 = vpop.permute.xlu1 %742 }
 0x1b0   : > { %v799_v12 = vperm.slane %v743_v63, %v798_v4 }
 0x1b2   : > { %v801_v21 = vsel %vm800_vm14, %v799_v12, %v797_v20 }
 0x1b5   : > { %v749_v8 = vpop.permute.xlu2 %748 }
 0x1b6   : > { %v807_v27 = vperm.slane %v749_v8, %v806_v17 }
 0x1be   : > { %v746_v9 = vpop.permute.xlu0 %745 }
 0x1bf   : > { %v803_v14 = vperm.slane %v746_v9, %v802_v6 }
 0x1c1   : > { %v805_v23 = vsel %vm804_vm15, %v803_v14, %v801_v21 }
 0x1c2   : > { %v809_v31 = vsel %vm808_vm0, %v807_v27, %v805_v23 }
 0x1dc   : > { %v752_v18 = vpop.permute.xlu1 %751 }
 0x1dd   : > { %v811_v25 = vperm.slane %v752_v18, %v810_v15 }
 0x1df   : > { %v813_v34 = vsel %vm812_vm1, %v811_v25, %v809_v31 }
 0x1e2   : > { %v758_v28 = vpop.permute.xlu2 %757 }
 0x1e3   : > { %v819_v33 = vperm.slane %v758_v28, %v818_v24 }
 0x1eb   : > { %v755_v30 = vpop.permute.xlu0 %754 }
 0x1ec   : > { %v815_v32 = vperm.slane %v755_v30, %v814_v22 }
 0x1ee   : > { %v817_v36 = vsel %vm816_vm2, %v815_v32, %v813_v34 }
 0x1ef   : > { %v821_v37 = vsel %vm820_vm3, %v819_v33, %v817_v36 }
 0x1f0   : > { %v823_v38 = vadd.f32 %v821_v37, %v415_v35 }
 0x1f2   : > { %824 = vst [vmem:[%s278_s19] sm:$0x1] %v823_v38 }
 0x1f3   : > { %1018 = shalt.err (!%p1015_p8)
}
 0x1f4   : > { %930 = dma.vmem_to_hbm [thread:$0]  (%p1135_p5), %s837_s20, 16, %s839_s21, %s826_s0  }
 0x1f5 PF: > { %p936_p9 = scmp.ge.s32.totalorder %s1055_s28, 2  ;;  %s850_s12 = sand.u32 1, %s1043_s25  }
 0x1f6   : > { %s851_s14 = scalar_lea.sflag [#allocation5], %s850_s12 }
 0x1f7   : > { %p933_p10 = pnand %p936_p9, %p1139_p6 }
 0x1f9   : > { %p934_p11 = pneg %p933_p10 }
 0x1fb   : > { %1038 = dma.done.wait (%p934_p11), %s851_s14, 16  }
 0x1fc   : > { %1040 = vsyncadd (%p934_p11), %s851_s14, 4294967280  ;;  %p24_p12 = scmp.ge.s32.totalorder %s1122_s30, 18   ;;  %s1291_s25 = smov %s1047_s26 }
 0x1fd   : > { %s1292_s26 = smov %s1051_s27  ;;  %s1293_s27 = smov %s1133_s9 }
 0x1fe   : > { %s1294_s28 = smov %s1122_s30  ;;  %26 = sbr.rel (!%p24_p12) target bundleno = 9 (0x9), region = 91 }
 0x203   :  { %856 = vsyncpa [#allocation5], 1 }
 0x204   :  { %858 = vsyncpa [#allocation5 + $0x1], 1 }

</bundles_post_ra>
